<compile_context>
chip_gen: v5e
topology: v5e:2x2
jax: 0.10.0
libtpu: 0.0.40
codegen_flags: <defaults>
</compile_context>

<pallas_src>
import functools

import jax
import jax.numpy as jnp
from jax.experimental import pallas as pl
from jax.experimental.pallas import tpu as pltpu

LANE = 128
SUBLANE = 8


def _round_up(x, m):
    return (x + m - 1) // m * m


def _policy_kernel(obs_ref, w1_ref, b1_ref, w2_ref, b2_ref, w3_ref, b3_ref,
                   out_ref, *, max_action):
    """Fused MLP: (TILE_B, obs) -> (TILE_B, Hp) -> (TILE_B, Hp) -> (TILE_B, Ap).

    Matmuls accumulate in f32 on the MXU; bias-add / ReLU / tanh / scaling are
    done in f32 on the VPU/EUP.  Weights may be bf16 (cast in the wrapper).
    """
    x = obs_ref[...]

    # fc1 + ReLU (f32 accumulation, f32 epilogue)
    h1 = jnp.dot(x, w1_ref[...], preferred_element_type=jnp.float32)
    h1 = jnp.maximum(h1 + b1_ref[...], 0.0)

    # fc2 + ReLU
    h1 = h1.astype(w2_ref.dtype)                 # keep MXU inputs in compute dtype
    h2 = jnp.dot(h1, w2_ref[...], preferred_element_type=jnp.float32)
    h2 = jnp.maximum(h2 + b2_ref[...], 0.0)

    # mu + tanh, scaled by (static) max_action
    h2 = h2.astype(w3_ref.dtype)
    a = jnp.dot(h2, w3_ref[...], preferred_element_type=jnp.float32)
    a = jnp.tanh(a + b3_ref[...]) * max_action

    out_ref[...] = a.astype(out_ref.dtype)


@functools.partial(
    jax.jit,
    static_argnames=("max_action", "action_dim", "tile_b", "compute_dtype"))
def policy_forward(obs, w1, b1, w2, b2, w3, b3, *, max_action, action_dim,
                   tile_b=1024, compute_dtype=jnp.float32):
    """Runs the fused policy MLP kernel.

    obs:  (B, obs_dim) float32
    w1:   (obs_dim, H_pad)   b1: (1, H_pad)
    w2:   (H_pad, H_pad)     b2: (1, H_pad)
    w3:   (H_pad, A_pad)     b3: (1, A_pad)
    Padded columns/rows of the weights are zero, so the logical math matches
    the unpadded nn.Linear layers exactly.  Returns (B, action_dim) float32.
    """
    B, obs_dim = obs.shape
    hid_pad = w1.shape[1]
    act_pad = w3.shape[1]

    # Batch tile: multiple of the 8-row sublane, capped by tile_b.
    tb = min(int(tile_b), _round_up(B, SUBLANE))
    tb = _round_up(tb, SUBLANE)
    b_pad = _round_up(B, tb)

    obs_p = obs
    if b_pad != B:
        obs_p = jnp.pad(obs, ((0, b_pad - B), (0, 0)))
    obs_p = obs_p.astype(compute_dtype)
    w1c = w1.astype(compute_dtype)
    w2c = w2.astype(compute_dtype)
    w3c = w3.astype(compute_dtype)

    grid = (b_pad // tb,)
    kernel = functools.partial(_policy_kernel, max_action=float(max_action))

    out = pl.pallas_call(
        kernel,
        out_shape=jax.ShapeDtypeStruct((b_pad, act_pad), jnp.float32),
        grid=grid,
        in_specs=[
            pl.BlockSpec((tb, obs_dim), lambda i: (i, 0)),        # obs tile
            pl.BlockSpec((obs_dim, hid_pad), lambda i: (0, 0)),   # w1 (resident)
            pl.BlockSpec((1, hid_pad), lambda i: (0, 0)),         # b1
            pl.BlockSpec((hid_pad, hid_pad), lambda i: (0, 0)),   # w2
            pl.BlockSpec((1, hid_pad), lambda i: (0, 0)),         # b2
            pl.BlockSpec((hid_pad, act_pad), lambda i: (0, 0)),   # w3
            pl.BlockSpec((1, act_pad), lambda i: (0, 0)),         # b3
        ],
        out_specs=pl.BlockSpec((tb, act_pad), lambda i: (i, 0)),  # lane-dense slab
        compiler_params=pltpu.CompilerParams(
            dimension_semantics=("parallel",)),
    )(obs_p, w1c, b1, w2c, b2, w3c, b3)

    return out[:B, :action_dim]


def init_linear(key, fan_in, fan_out, fan_in_pad, fan_out_pad):
    """torch.nn.Linear-style init (U[-1/sqrt(fan_in), 1/sqrt(fan_in)]).

    Weight returned pre-transposed as (fan_in_pad, fan_out_pad) with zero
    padding, bias as (1, fan_out_pad) with zero padding.
    """
    kw, kb = jax.random.split(key)
    bound = 1.0 / jnp.sqrt(float(fan_in))
    w = jax.random.uniform(kw, (fan_in, fan_out), jnp.float32, -bound, bound)
    b = jax.random.uniform(kb, (1, fan_out), jnp.float32, -bound, bound)
    w = jnp.pad(w, ((0, fan_in_pad - fan_in), (0, fan_out_pad - fan_out)))
    b = jnp.pad(b, ((0, 0), (0, fan_out_pad - fan_out)))
    return w, b


def init_params(key, obs_dim, action_dim, hidden_dim):
    hid_pad = _round_up(hidden_dim, LANE)
    act_pad = _round_up(action_dim, LANE)
    k1, k2, k3 = jax.random.split(key, 3)
    w1, b1 = init_linear(k1, obs_dim, hidden_dim, obs_dim, hid_pad)
    w2, b2 = init_linear(k2, hidden_dim, hidden_dim, hid_pad, hid_pad)
    w3, b3 = init_linear(k3, hidden_dim, action_dim, hid_pad, act_pad)
    return w1, b1, w2, b2, w3, b3


def reference_forward(obs, w1, b1, w2, b2, w3, b3, max_action):
    x = jnp.maximum(obs @ w1 + b1, 0.0)
    x = jnp.maximum(x @ w2 + b2, 0.0)
    return jnp.tanh(x @ w3 + b3) * max_action


if __name__ == "__main__":
    obs_dim, hidden_dim, action_dim = 8, 32, 4
    max_action = 2.0

    root = jax.random.PRNGKey(0)
    k_obs_s, k_obs_l, k_params = jax.random.split(root, 3)
    params = init_params(k_params, obs_dim, action_dim, hidden_dim)

    # --- Test 1: tiny batch, f32 compute (bit-tight vs reference) -----------
    obs_small = jax.random.normal(k_obs_s, (2, obs_dim), jnp.float32)
    out_small = policy_forward(
        obs_small, *params,
        max_action=max_action, action_dim=action_dim,
        tile_b=1024, compute_dtype=jnp.float32)
    out_small = jax.block_until_ready(out_small)

    ref_small = reference_forward(obs_small, *params, max_action)[:, :action_dim]
    assert out_small.shape == (2, action_dim)
    assert jnp.allclose(out_small, ref_small, atol=1e-5, rtol=1e-5), \
        "f32 kernel mismatch vs JAX reference"

    # --- Test 2: larger batch, bf16 matmul inputs, multi-step batch grid ----
    obs_large = jax.random.normal(k_obs_l, (300, obs_dim), jnp.float32)
    out_large = policy_forward(
        obs_large, *params,
        max_action=max_action, action_dim=action_dim,
        tile_b=256, compute_dtype=jnp.bfloat16)
    out_large = jax.block_until_ready(out_large)

    ref_large = reference_forward(obs_large, *params, max_action)[:, :action_dim]
    assert out_large.shape == (300, action_dim)
    assert jnp.allclose(out_large, ref_large, atol=5e-2, rtol=5e-2), \
        "bf16 kernel mismatch vs JAX reference"

    print("KERNEL_OK")
</pallas_src>

<mosaic_0001>
module attributes {stable_mosaic.version = 11 : i64} {
  func.func @_policy_kernel(%arg0: i32, %arg1: memref<8x8xf32, #tpu.memory_space<vmem>>, %arg2: memref<8x128xf32, #tpu.memory_space<vmem>>, %arg3: memref<1x128xf32, #tpu.memory_space<vmem>>, %arg4: memref<128x128xf32, #tpu.memory_space<vmem>>, %arg5: memref<1x128xf32, #tpu.memory_space<vmem>>, %arg6: memref<128x128xf32, #tpu.memory_space<vmem>>, %arg7: memref<1x128xf32, #tpu.memory_space<vmem>>, %arg8: memref<8x128xf32, #tpu.memory_space<vmem>>) attributes {dimension_semantics = [#tpu.dimension_semantics<parallel>], iteration_bounds = array<i64: 1>, scalar_prefetch = 0 : i64, scratch_operands = 0 : i64, tpu.core_type = #tpu.core_type<tc>, window_params = [{transform_indices = @transform_0, window_bounds = array<i64: 8, 8>}, {pipeline_mode = #tpu.pipeline_mode<synchronous>, transform_indices = @transform_1, window_bounds = array<i64: 8, 128>}, {pipeline_mode = #tpu.pipeline_mode<synchronous>, transform_indices = @transform_2, window_bounds = array<i64: 1, 128>}, {pipeline_mode = #tpu.pipeline_mode<synchronous>, transform_indices = @transform_3, window_bounds = array<i64: 128, 128>}, {pipeline_mode = #tpu.pipeline_mode<synchronous>, transform_indices = @transform_4, window_bounds = array<i64: 1, 128>}, {pipeline_mode = #tpu.pipeline_mode<synchronous>, transform_indices = @transform_5, window_bounds = array<i64: 128, 128>}, {pipeline_mode = #tpu.pipeline_mode<synchronous>, transform_indices = @transform_6, window_bounds = array<i64: 1, 128>}, {transform_indices = @transform_7, window_bounds = array<i64: 8, 128>}]} {
    %c0 = arith.constant 0 : index
    %c0_0 = arith.constant 0 : index
    %0 = vector.load %arg1[%c0, %c0_0] : memref<8x8xf32, #tpu.memory_space<vmem>>, vector<8x8xf32>
    %c0_1 = arith.constant 0 : index
    %c0_2 = arith.constant 0 : index
    %1 = vector.load %arg2[%c0_1, %c0_2] : memref<8x128xf32, #tpu.memory_space<vmem>>, vector<8x128xf32>
    %cst = arith.constant dense<0.000000e+00> : vector<8x128xf32>
    %2 = tpu.matmul %0, %1, %cst {dimension_numbers = #tpu.dot_dimension_numbers<[1], [0], [0], [1], [0, 0, 1, 1], [], []>} : vector<8x8xf32>, vector<8x128xf32>, vector<8x128xf32> -> vector<8x128xf32>
    %c0_3 = arith.constant 0 : index
    %c0_4 = arith.constant 0 : index
    %3 = vector.load %arg3[%c0_3, %c0_4] : memref<1x128xf32, #tpu.memory_space<vmem>>, vector<1x128xf32>
    %4 = vector.broadcast %3 : vector<1x128xf32> to vector<8x128xf32>
    %5 = arith.addf %2, %4 : vector<8x128xf32>
    %cst_5 = arith.constant 0.000000e+00 : f32
    %6 = vector.broadcast %cst_5 : f32 to vector<8x128xf32>
    %7 = arith.maximumf %5, %6 : vector<8x128xf32>
    %c0_6 = arith.constant 0 : index
    %c0_7 = arith.constant 0 : index
    %8 = vector.load %arg4[%c0_6, %c0_7] : memref<128x128xf32, #tpu.memory_space<vmem>>, vector<128x128xf32>
    %cst_8 = arith.constant dense<0.000000e+00> : vector<8x128xf32>
    %9 = tpu.matmul %7, %8, %cst_8 {dimension_numbers = #tpu.dot_dimension_numbers<[1], [0], [0], [1], [0, 0, 1, 1], [], []>} : vector<8x128xf32>, vector<128x128xf32>, vector<8x128xf32> -> vector<8x128xf32>
    %c0_9 = arith.constant 0 : index
    %c0_10 = arith.constant 0 : index
    %10 = vector.load %arg5[%c0_9, %c0_10] : memref<1x128xf32, #tpu.memory_space<vmem>>, vector<1x128xf32>
    %11 = vector.broadcast %10 : vector<1x128xf32> to vector<8x128xf32>
    %12 = arith.addf %9, %11 : vector<8x128xf32>
    %cst_11 = arith.constant 0.000000e+00 : f32
    %13 = vector.broadcast %cst_11 : f32 to vector<8x128xf32>
    %14 = arith.maximumf %12, %13 : vector<8x128xf32>
    %c0_12 = arith.constant 0 : index
    %c0_13 = arith.constant 0 : index
    %15 = vector.load %arg6[%c0_12, %c0_13] : memref<128x128xf32, #tpu.memory_space<vmem>>, vector<128x128xf32>
    %cst_14 = arith.constant dense<0.000000e+00> : vector<8x128xf32>
    %16 = tpu.matmul %14, %15, %cst_14 {dimension_numbers = #tpu.dot_dimension_numbers<[1], [0], [0], [1], [0, 0, 1, 1], [], []>} : vector<8x128xf32>, vector<128x128xf32>, vector<8x128xf32> -> vector<8x128xf32>
    %c0_15 = arith.constant 0 : index
    %c0_16 = arith.constant 0 : index
    %17 = vector.load %arg7[%c0_15, %c0_16] : memref<1x128xf32, #tpu.memory_space<vmem>>, vector<1x128xf32>
    %18 = vector.broadcast %17 : vector<1x128xf32> to vector<8x128xf32>
    %19 = arith.addf %16, %18 : vector<8x128xf32>
    %20 = math.tanh %19 : vector<8x128xf32>
    %cst_17 = arith.constant 2.000000e+00 : f32
    %21 = vector.broadcast %cst_17 : f32 to vector<8x128xf32>
    %22 = arith.mulf %20, %21 : vector<8x128xf32>
    %c0_18 = arith.constant 0 : index
    %c0_19 = arith.constant 0 : index
    %23 = vector.load %arg8[%c0_18, %c0_19] : memref<8x128xf32, #tpu.memory_space<vmem>>, vector<8x128xf32>
    tpu.vector_store %arg8[%c0_18, %c0_19], %22 {strides = array<i32>} : memref<8x128xf32, #tpu.memory_space<vmem>>, vector<8x128xf32>,
    return
  }
  func.func @transform_0(%arg0: i32) -> (i32, i32) {
    %c0_i32 = arith.constant 0 : i32
    %c0_i32_0 = arith.constant 0 : i32
    return %arg0, %c0_i32 : i32, i32
  }
  func.func @transform_1(%arg0: i32) -> (i32, i32) {
    %c0_i32 = arith.constant 0 : i32
    %c0_i32_0 = arith.constant 0 : i32
    %c0_i32_1 = arith.constant 0 : i32
    return %c0_i32, %c0_i32_0 : i32, i32
  }
  func.func @transform_2(%arg0: i32) -> (i32, i32) {
    %c0_i32 = arith.constant 0 : i32
    %c0_i32_0 = arith.constant 0 : i32
    %c0_i32_1 = arith.constant 0 : i32
    return %c0_i32, %c0_i32_0 : i32, i32
  }
  func.func @transform_3(%arg0: i32) -> (i32, i32) {
    %c0_i32 = arith.constant 0 : i32
    %c0_i32_0 = arith.constant 0 : i32
    %c0_i32_1 = arith.constant 0 : i32
    return %c0_i32, %c0_i32_0 : i32, i32
  }
  func.func @transform_4(%arg0: i32) -> (i32, i32) {
    %c0_i32 = arith.constant 0 : i32
    %c0_i32_0 = arith.constant 0 : i32
    %c0_i32_1 = arith.constant 0 : i32
    return %c0_i32, %c0_i32_0 : i32, i32
  }
  func.func @transform_5(%arg0: i32) -> (i32, i32) {
    %c0_i32 = arith.constant 0 : i32
    %c0_i32_0 = arith.constant 0 : i32
    %c0_i32_1 = arith.constant 0 : i32
    return %c0_i32, %c0_i32_0 : i32, i32
  }
  func.func @transform_6(%arg0: i32) -> (i32, i32) {
    %c0_i32 = arith.constant 0 : i32
    %c0_i32_0 = arith.constant 0 : i32
    %c0_i32_1 = arith.constant 0 : i32
    return %c0_i32, %c0_i32_0 : i32, i32
  }
  func.func @transform_7(%arg0: i32) -> (i32, i32) {
    %c0_i32 = arith.constant 0 : i32
    %c0_i32_0 = arith.constant 0 : i32
    return %arg0, %c0_i32 : i32, i32
  }
}

</mosaic_0001>

<bundles_post_ra>
// kernel: policy_forward.1
= control target key start
LH: loop header
LB: loop body
LE: loop exit
PB: predicated region body
PF: predicated region fallthrough
CT: control target
= control target key end

     0   :  { %12 = vsyncpa [#allocation3], 0  ;;  %s309_s0 = inlined_call_operand.vmem [shape: f32[8,8], index: 0, kind: input, shape index: {}]   ;;  %s310_s1 = inlined_call_operand.vmem [shape: f32[8,128], index: 1, kind: input, shape index: {}]   ;;  %s311_s2 = inlined_call_operand.vmem [shape: f32[1,128], index: 2, kind: input, shape index: {}]   ;;  %s312_s3 = inlined_call_operand.hbm [shape: f32[128,128], index: 3, kind: input, shape index: {}]   ;;  %s313_s4 = inlined_call_operand.vmem [shape: f32[1,128], index: 4, kind: input, shape index: {}]   ;;  %s314_s5 = inlined_call_operand.hbm [shape: f32[128,128], index: 5, kind: input, shape index: {}]   ;;  %s315_s6 = inlined_call_operand.vmem [shape: f32[1,128], index: 6, kind: input, shape index: {}]   ;;  %s316_s7 = inlined_call_operand.vmem [shape: f32[8,128], index: 7, kind: output, shape index: {}]  }
   0x1   :  { %s24_s26 = sshll.u32 %s312_s3, 4  ;;  %s25_s26 = int_to_ptr.hbm [resolvable:$true] %s24_s26 }
   0x2   :  { %13 = vsyncpa [#allocation5], 0  ;;  %s241_s27 = smov [#allocation2]   ;;  %s39_s8 = sshll.u32 %s314_s5, 4  ;;  %s40_s8 = int_to_ptr.hbm [resolvable:$true] %s39_s8 }
   0x3   :  { %s26_s28 = sshll.u32 %s241_s27, 4  ;;  %s242_s9 = smov 128   ;;  %s27_s28 = int_to_ptr.vmem [resolvable:$true] %s26_s28 }
   0x4   :  { %s243_s10 = smov 8   ;;  %s244_s11 = smov [#allocation4]  }
   0x5   :  { %32 = dma.hbm_to_vmem [thread:$0]  %s25_s26, 2048, %s27_s28, [#allocation3], %s242_s9, %s242_s9, %s243_s10  }
   0x6   :  { %s41_s12 = sshll.u32 %s244_s11, 4  ;;  %s42_s12 = int_to_ptr.vmem [resolvable:$true] %s41_s12 }
   0x7   :  { %47 = dma.hbm_to_vmem [thread:$0]  %s40_s8, 2048, %s42_s12, [#allocation5], %s242_s9, %s242_s9, %s243_s10  }
   0x8   :  { %237 = dma.done.wait [#allocation3], 2048  }
   0x9   :  { %238 = vsyncadd [#allocation3], 4294965248 }
   0xa   :  { %239 = dma.done.wait [#allocation5], 2048  }
   0xb   :  { %240 = vsyncadd [#allocation5], 4294965248  ;;  %vm64_vm0 = vcmask 64512   ;;  %v59_v0 = vld [vmem:[%s310_s1] sm:$0xff]  ;;  %v104_v2 = vld [vmem:[#allocation2 + $0x78] sm:$0xff] }
   0xc   :  { %v58_v1 = vld [vmem:[%s309_s0] sm:$0xff]  ;;  %83 = vmatpush.msra.mxu0 %v59_v0  ;;  %109 = vmatpush.msra.mxu1 %v104_v2  ;;  %v103_v3 = vld [vmem:[#allocation2 + $0x70] sm:$0xff]  ;;  %v102_v4 = vld [vmem:[#allocation2 + $0x68] sm:$0xff] }
   0xd   :  { %179 = vmatmul.msk.f32.vlgmr.msra.gmra.mxu0 %vm64_vm0, %v58_v1  ;;  %v101_v5 = vld [vmem:[#allocation2 + $0x60] sm:$0xff]  ;;  %v100_v6 = vld [vmem:[#allocation2 + $0x58] sm:$0xff]  ;;  %v99_v7 = vld [vmem:[#allocation2 + $0x50] sm:$0xff] }
   0xe   :  { %110 = vmatpush.msra.mxu1 %v103_v3  ;;  %v98_v8 = vld [vmem:[#allocation2 + $0x48] sm:$0xff]  ;;  %v97_v9 = vld [vmem:[#allocation2 + $0x40] sm:$0xff]  ;;  %v96_v10 = vld [vmem:[#allocation2 + $0x38] sm:$0xff] }
   0xf   :  { %v95_v11 = vld [vmem:[#allocation2 + $0x30] sm:$0xff]  ;;  %v94_v12 = vld [vmem:[#allocation2 + $0x28] sm:$0xff]  ;;  %v93_v13 = vld [vmem:[#allocation2 + $0x20] sm:$0xff] }
  0x10   :  { %111 = vmatpush.msra.mxu1 %v102_v4  ;;  %v92_v14 = vld [vmem:[#allocation2 + $0x18] sm:$0xff]  ;;  %v91_v15 = vld [vmem:[#allocation2 + $0x10] sm:$0xff]  ;;  %v90_v16 = vld [vmem:[#allocation2 + $0x8] sm:$0xff] }
  0x11   :  { %v89_v17 = vld [vmem:[#allocation2] sm:$0xff]  ;;  %v145_v18 = vld [vmem:[#allocation4 + $0x78] sm:$0xff]  ;;  %v144_v19 = vld [vmem:[#allocation4 + $0x70] sm:$0xff] }
  0x12   :  { %112 = vmatpush.msra.mxu1 %v101_v5  ;;  %150 = vmatpush.msra.mxu2 %v145_v18  ;;  %v143_v20 = vld [vmem:[#allocation4 + $0x68] sm:$0xff]  ;;  %v142_v21 = vld [vmem:[#allocation4 + $0x60] sm:$0xff]  ;;  %v141_v22 = vld [vmem:[#allocation4 + $0x58] sm:$0xff] }
  0x13   :  { %v140_v23 = vld [vmem:[#allocation4 + $0x50] sm:$0xff]  ;;  %v139_v24 = vld [vmem:[#allocation4 + $0x48] sm:$0xff]  ;;  %v138_v25 = vld [vmem:[#allocation4 + $0x40] sm:$0xff] }
  0x14   :  { %113 = vmatpush.msra.mxu1 %v100_v6  ;;  %151 = vmatpush.msra.mxu2 %v144_v19  ;;  %v137_v26 = vld [vmem:[#allocation4 + $0x38] sm:$0xff]  ;;  %v136_v27 = vld [vmem:[#allocation4 + $0x30] sm:$0xff]  ;;  %v135_v28 = vld [vmem:[#allocation4 + $0x28] sm:$0xff] }
  0x15   :  { %v134_v29 = vld [vmem:[#allocation4 + $0x20] sm:$0xff]  ;;  %v133_v30 = vld [vmem:[#allocation4 + $0x18] sm:$0xff]  ;;  %v132_v35 = vld [vmem:[#allocation4 + $0x10] sm:$0xff] }
  0x16   :  { %114 = vmatpush.msra.mxu1 %v99_v7  ;;  %152 = vmatpush.msra.mxu2 %v143_v20  ;;  %v184_v31 = vld [vmem:[%s311_s2] ss:$0 sm:$0xff]  ;;  %v131_v36 = vld [vmem:[#allocation4 + $0x8] sm:$0xff] }
  0x17   :  { %v130_v37 = vld [vmem:[#allocation4] sm:$0xff] }
  0x18   :  { %115 = vmatpush.msra.mxu1 %v98_v8  ;;  %153 = vmatpush.msra.mxu2 %v142_v21  ;;  %v185_v38 = vld [vmem:[%s313_s4] ss:$0 sm:$0xff] }
  0x19   :  { %v186_v42 = vld [vmem:[%s315_s6] ss:$0 sm:$0xff] }
  0x1a   :  { %116 = vmatpush.msra.mxu1 %v97_v9  ;;  %154 = vmatpush.msra.mxu2 %v141_v22 }
  0x1c   :  { %117 = vmatpush.msra.mxu1 %v96_v10  ;;  %155 = vmatpush.msra.mxu2 %v140_v23 }
  0x1e   :  { %118 = vmatpush.msra.mxu1 %v95_v11  ;;  %156 = vmatpush.msra.mxu2 %v139_v24 }
  0x20   :  { %119 = vmatpush.msra.mxu1 %v94_v12  ;;  %157 = vmatpush.msra.mxu2 %v138_v25 }
  0x22   :  { %120 = vmatpush.msra.mxu1 %v93_v13  ;;  %158 = vmatpush.msra.mxu2 %v137_v26 }
  0x24   :  { %121 = vmatpush.msra.mxu1 %v92_v14  ;;  %159 = vmatpush.msra.mxu2 %v136_v27 }
  0x26   :  { %122 = vmatpush.msra.mxu1 %v91_v15  ;;  %160 = vmatpush.msra.mxu2 %v135_v28 }
  0x28   :  { %123 = vmatpush.msra.mxu1 %v90_v16  ;;  %161 = vmatpush.msra.mxu2 %v134_v29 }
  0x2a   :  { %124 = vmatpush.msra.mxu1 %v89_v17  ;;  %162 = vmatpush.msra.mxu2 %v133_v30 }
  0x2c   :  { %163 = vmatpush.msra.mxu2 %v132_v35 }
  0x2e   :  { %164 = vmatpush.msra.mxu2 %v131_v36 }
  0x30   :  { %165 = vmatpush.msra.mxu2 %v130_v37 }
  0x8a   :  { %v85_v32 = vpop.f32.mrf.mxu0 }
  0x8b   :  { %v86_v33 = vadd.f32 %v184_v31, %v85_v32 }
  0x8d   :  { %v88_v34 = vmax.f32 %v86_v33, 0.0 }
  0x8f   :  { %125 = vmatmul.f32.vlgmr.msra.gmra.mxu1 %v88_v34 }
 0x10c   :  { %v126_v39 = vpop.f32.mrf.mxu1 }
 0x10d   :  { %v127_v40 = vadd.f32 %v185_v38, %v126_v39 }
 0x10f   :  { %v129_v41 = vmax.f32 %v127_v40, 0.0 }
 0x111   :  { %166 = vmatmul.f32.vlgmr.msra.gmra.mxu2 %v129_v41 }
 0x194   :  { %v167_v43 = vpop.f32.mrf.mxu2 }
 0x195   :  { %v168_v44 = vadd.f32 %v186_v42, %v167_v43 }
 0x197   :  { %187 = vtanh.f32 %v168_v44 }
 0x19d   :  { %v188_v45 = vpop.eup %187 }
 0x19e   :  { %v171_v46 = vmul.f32 2.0, %v188_v45 }
 0x1a0   :  { %172 = vst [vmem:[%s316_s7] sm:$0xff] %v171_v46 }
 0x1a1   :  { %177 = vsyncpa [#allocation3], 1 }
 0x1a2   :  { %178 = vsyncpa [#allocation5], 1 }

</bundles_post_ra>
